<compile_context>
chip_gen: v7x
topology: tpu7x:2x2x1
jax: 0.10.0
libtpu: 0.0.40
codegen_flags: <defaults>
</compile_context>

<pallas_src>
import functools
import math

import jax
import jax.numpy as jnp
from jax import lax
from jax.experimental import pallas as pl
from jax.experimental.pallas import tpu as pltpu


def _policy_kernel(x_ref, w1_ref, w2_ref, wh_ref, b_ref, out_ref, *, out_dims):
    hidden = w1_ref.shape[1]
    head_w = wh_ref.shape[1]  # lane-padded fused head width (multiple of 128)

    x = x_ref[...]

    # Packed biases: row 0 = b1, row 1 = b2, row 2 = [bmu | bstd | 0-pad].
    b1 = b_ref[0:1, :hidden]
    b2 = b_ref[1:2, :hidden]
    bh = b_ref[2:3, :head_w]

    # fc1 + relu
    h = jnp.dot(x, w1_ref[...], preferred_element_type=jnp.float32) + b1
    h = jnp.maximum(h, 0.0)

    # fc2 + relu
    h = jnp.dot(h, w2_ref[...], preferred_element_type=jnp.float32) + b2
    h = jnp.maximum(h, 0.0)

    # Fused mu|std head: one MXU pass, one lane-dense (multiple-of-128) slab.
    s = jnp.dot(h, wh_ref[...], preferred_element_type=jnp.float32) + bh

    # Columns [0, out_dims) are the mu head (tanh); the rest take the softplus
    # branch (valid std columns are [out_dims, 2*out_dims); padded columns are
    # sliced away in the wrapper).
    col = lax.broadcasted_iota(jnp.int32, s.shape, 1)
    loc = jnp.tanh(s)
    # Single-branch numerically stable softplus: max(s,0) + log1p(exp(-|s|)).
    scale = jnp.maximum(s, 0.0) + jnp.log1p(jnp.exp(-jnp.abs(s))) + 0.001
    out_ref[...] = jnp.where(col < out_dims, loc, scale)


def pack_params(params):
    """One-time packing of the fused head weight and biases.

    Hoisted out of the forward pass so the per-call wrapper does zero
    HBM-side pad/scatter work.  Returns (packed_dict, out_dims).
    """
    hidden = params["w1"].shape[1]
    out_dims = params["wmu"].shape[1]

    # Lane-dense fused head: pad 2*out_dims up to a multiple of 128.
    head_w = pl.cdiv(2 * out_dims, 128) * 128
    w_head = jnp.zeros((hidden, head_w), jnp.float32)
    w_head = w_head.at[:, :out_dims].set(params["wmu"].astype(jnp.float32))
    w_head = w_head.at[:, out_dims:2 * out_dims].set(params["wstd"].astype(jnp.float32))

    # Pack all biases into one (3, W) buffer (one DMA instead of four).
    bw = max(hidden, head_w)
    bias_pack = jnp.zeros((3, bw), jnp.float32)
    bias_pack = bias_pack.at[0, :hidden].set(params["b1"][0])
    bias_pack = bias_pack.at[1, :hidden].set(params["b2"][0])
    bias_pack = bias_pack.at[2, :out_dims].set(params["bmu"][0])
    bias_pack = bias_pack.at[2, out_dims:2 * out_dims].set(params["bstd"][0])

    packed = dict(
        w1=params["w1"].astype(jnp.float32),
        w2=params["w2"].astype(jnp.float32),
        w_head=w_head,
        bias_pack=bias_pack,
    )
    return packed, out_dims


def _pick_batch_tile(B):
    """Batch tile: big tiles, >=2 grid steps when B is large (v7x dual-TC)."""
    up8 = lambda n: ((n + 7) // 8) * 8
    if B < 512:
        # One full-extent block: always layout-legal, no pipelining needed.
        return B
    # Ensure at least 2 grid steps so ("parallel",) can shard the batch across
    # both TensorCores on v7x; cap at 1024 rows (~3 MiB VMEM footprint, well
    # inside even v5e's 16 MiB scoped-VMEM default).
    return min(1024, up8(pl.cdiv(B, 2)))


def gradient_policy_forward(x, packed, out_dims):
    """x: (B, in_features) f32. packed: output of pack_params."""
    x = x.astype(jnp.float32)
    B, f_in = x.shape
    w1, w2, w_head, bias_pack = (packed["w1"], packed["w2"],
                                 packed["w_head"], packed["bias_pack"])
    hidden = w1.shape[1]
    head_w = w_head.shape[1]

    tb = _pick_batch_tile(B)
    grid = (pl.cdiv(B, tb),)  # cdiv grid: block shape need not divide B

    cost = pl.CostEstimate(
        flops=2 * B * (f_in * hidden + hidden * hidden + hidden * head_w),
        transcendentals=3 * B * head_w,
        bytes_accessed=4 * (x.size + w1.size + w2.size
                            + w_head.size + bias_pack.size + B * head_w),
    )

    # Weights/biases: constant index_map -> stay VMEM-resident across batch tiles.
    const = lambda shape: pl.BlockSpec(shape, lambda i: (0, 0))

    y = pl.pallas_call(
        functools.partial(_policy_kernel, out_dims=out_dims),
        out_shape=jax.ShapeDtypeStruct((B, head_w), jnp.float32),
        grid=grid,
        in_specs=[
            pl.BlockSpec((tb, f_in), lambda i: (i, 0)),   # x: tiled on batch
            const(w1.shape),
            const(w2.shape),
            const(w_head.shape),
            const(bias_pack.shape),
        ],
        out_specs=pl.BlockSpec((tb, head_w), lambda i: (i, 0)),
        compiler_params=pltpu.CompilerParams(
            dimension_semantics=("parallel",)),
        cost_estimate=cost,
    )(x, w1, w2, w_head, bias_pack)

    loc = y[:, :out_dims]
    scale = y[:, out_dims:2 * out_dims]
    return loc, scale


def init_params(key, in_features, out_dims, hidden_size=128):
    """Deterministic init mimicking PyTorch nn.Linear default (uniform +-1/sqrt(fan_in))."""
    def linear(key, fan_in, fan_out):
        kw, kb = jax.random.split(key)
        bound = 1.0 / math.sqrt(fan_in)
        w = jax.random.uniform(kw, (fan_in, fan_out), jnp.float32, -bound, bound)
        b = jax.random.uniform(kb, (1, fan_out), jnp.float32, -bound, bound)
        return w, b

    k1, k2, k3, k4 = jax.random.split(key, 4)
    w1, b1 = linear(k1, in_features, hidden_size)
    w2, b2 = linear(k2, hidden_size, hidden_size)
    wmu, bmu = linear(k3, hidden_size, out_dims)
    wstd, bstd = linear(k4, hidden_size, out_dims)
    return dict(w1=w1, b1=b1, w2=w2, b2=b2,
                wmu=wmu, bmu=bmu, wstd=wstd, bstd=bstd)


def _reference(x, params):
    h = jax.nn.relu(x @ params["w1"] + params["b1"])
    h = jax.nn.relu(h @ params["w2"] + params["b2"])
    loc = jnp.tanh(h @ params["wmu"] + params["bmu"])
    scale = jax.nn.softplus(h @ params["wstd"] + params["bstd"]) + 0.001
    return loc, scale


if __name__ == "__main__":
    key = jax.random.PRNGKey(0)
    kx, kp, kx2 = jax.random.split(key, 3)

    in_features, out_dims, hidden = 32, 8, 128
    params = init_params(kp, in_features, out_dims, hidden)
    packed, od = pack_params(params)  # one-time packing, reused across calls

    # Small batch: single full-extent block (grid of 1).
    B = 8
    x = jax.random.normal(kx, (B, in_features), jnp.float32)
    loc, scale = gradient_policy_forward(x, packed, od)
    jax.block_until_ready((loc, scale))
    loc_ref, scale_ref = _reference(x, params)
    assert loc.shape == (B, out_dims) and scale.shape == (B, out_dims)
    assert jnp.allclose(loc, loc_ref, atol=1e-5)
    assert jnp.allclose(scale, scale_ref, atol=1e-5)

    # Ragged larger batch: exercises the cdiv grid / >=2-step dual-TC path.
    B2 = 520
    x2 = jax.random.normal(kx2, (B2, in_features), jnp.float32)
    loc2, scale2 = gradient_policy_forward(x2, packed, od)
    jax.block_until_ready((loc2, scale2))
    loc2_ref, scale2_ref = _reference(x2, params)
    assert loc2.shape == (B2, out_dims) and scale2.shape == (B2, out_dims)
    assert jnp.allclose(loc2, loc2_ref, atol=1e-5)
    assert jnp.allclose(scale2, scale2_ref, atol=1e-5)

    print("KERNEL_OK")
</pallas_src>

<mosaic_0001>
module attributes {stable_mosaic.version = 11 : i64} {
  func.func @_policy_kernel(%arg0: i32, %arg1: memref<8x32xf32, #tpu.memory_space<vmem>>, %arg2: memref<32x128xf32, #tpu.memory_space<vmem>>, %arg3: memref<128x128xf32, #tpu.memory_space<vmem>>, %arg4: memref<128x128xf32, #tpu.memory_space<vmem>>, %arg5: memref<3x128xf32, #tpu.memory_space<vmem>>, %arg6: memref<8x128xf32, #tpu.memory_space<vmem>>) attributes {dimension_semantics = [#tpu.dimension_semantics<parallel>], iteration_bounds = array<i64: 1>, scalar_prefetch = 0 : i64, scratch_operands = 0 : i64, tpu.core_type = #tpu.core_type<tc>, window_params = [{transform_indices = @transform_0, window_bounds = array<i64: 8, 32>}, {pipeline_mode = #tpu.pipeline_mode<synchronous>, transform_indices = @transform_1, window_bounds = array<i64: 32, 128>}, {pipeline_mode = #tpu.pipeline_mode<synchronous>, transform_indices = @transform_2, window_bounds = array<i64: 128, 128>}, {pipeline_mode = #tpu.pipeline_mode<synchronous>, transform_indices = @transform_3, window_bounds = array<i64: 128, 128>}, {pipeline_mode = #tpu.pipeline_mode<synchronous>, transform_indices = @transform_4, window_bounds = array<i64: 3, 128>}, {transform_indices = @transform_5, window_bounds = array<i64: 8, 128>}]} {
    %c0 = arith.constant 0 : index
    %c0_0 = arith.constant 0 : index
    %0 = vector.load %arg1[%c0, %c0_0] : memref<8x32xf32, #tpu.memory_space<vmem>>, vector<8x32xf32>
    %c0_1 = arith.constant 0 : index
    %c0_2 = arith.constant 0 : index
    %1 = vector.load %arg5[%c0_1, %c0_2] : memref<3x128xf32, #tpu.memory_space<vmem>>, vector<1x128xf32>
    %c1 = arith.constant 1 : index
    %c0_3 = arith.constant 0 : index
    %2 = vector.load %arg5[%c1, %c0_3] : memref<3x128xf32, #tpu.memory_space<vmem>>, vector<1x128xf32>
    %c2 = arith.constant 2 : index
    %c0_4 = arith.constant 0 : index
    %3 = vector.load %arg5[%c2, %c0_4] : memref<3x128xf32, #tpu.memory_space<vmem>>, vector<1x128xf32>
    %c0_5 = arith.constant 0 : index
    %c0_6 = arith.constant 0 : index
    %4 = vector.load %arg2[%c0_5, %c0_6] : memref<32x128xf32, #tpu.memory_space<vmem>>, vector<32x128xf32>
    %cst = arith.constant dense<0.000000e+00> : vector<8x128xf32>
    %5 = tpu.matmul %0, %4, %cst {dimension_numbers = #tpu.dot_dimension_numbers<[1], [0], [0], [1], [0, 0, 1, 1], [], []>} : vector<8x32xf32>, vector<32x128xf32>, vector<8x128xf32> -> vector<8x128xf32>
    %6 = vector.broadcast %1 : vector<1x128xf32> to vector<8x128xf32>
    %7 = arith.addf %5, %6 : vector<8x128xf32>
    %cst_7 = arith.constant 0.000000e+00 : f32
    %8 = vector.broadcast %cst_7 : f32 to vector<8x128xf32>
    %9 = arith.maximumf %7, %8 : vector<8x128xf32>
    %c0_8 = arith.constant 0 : index
    %c0_9 = arith.constant 0 : index
    %10 = vector.load %arg3[%c0_8, %c0_9] : memref<128x128xf32, #tpu.memory_space<vmem>>, vector<128x128xf32>
    %cst_10 = arith.constant dense<0.000000e+00> : vector<8x128xf32>
    %11 = tpu.matmul %9, %10, %cst_10 {dimension_numbers = #tpu.dot_dimension_numbers<[1], [0], [0], [1], [0, 0, 1, 1], [], []>} : vector<8x128xf32>, vector<128x128xf32>, vector<8x128xf32> -> vector<8x128xf32>
    %12 = vector.broadcast %2 : vector<1x128xf32> to vector<8x128xf32>
    %13 = arith.addf %11, %12 : vector<8x128xf32>
    %cst_11 = arith.constant 0.000000e+00 : f32
    %14 = vector.broadcast %cst_11 : f32 to vector<8x128xf32>
    %15 = arith.maximumf %13, %14 : vector<8x128xf32>
    %c0_12 = arith.constant 0 : index
    %c0_13 = arith.constant 0 : index
    %16 = vector.load %arg4[%c0_12, %c0_13] : memref<128x128xf32, #tpu.memory_space<vmem>>, vector<128x128xf32>
    %cst_14 = arith.constant dense<0.000000e+00> : vector<8x128xf32>
    %17 = tpu.matmul %15, %16, %cst_14 {dimension_numbers = #tpu.dot_dimension_numbers<[1], [0], [0], [1], [0, 0, 1, 1], [], []>} : vector<8x128xf32>, vector<128x128xf32>, vector<8x128xf32> -> vector<8x128xf32>
    %18 = vector.broadcast %3 : vector<1x128xf32> to vector<8x128xf32>
    %19 = arith.addf %17, %18 : vector<8x128xf32>
    %20 = tpu.iota {dimensions = array<i32: 1>} : vector<8x128xi32>
    %21 = math.tanh %19 : vector<8x128xf32>
    %cst_15 = arith.constant 0.000000e+00 : f32
    %22 = vector.broadcast %cst_15 : f32 to vector<8x128xf32>
    %23 = arith.maximumf %19, %22 : vector<8x128xf32>
    %24 = math.absf %19 : vector<8x128xf32>
    %cst_16 = arith.constant 0.000000e+00 : f32
    %25 = vector.broadcast %cst_16 : f32 to vector<8x128xf32>
    %26 = arith.subf %25, %24 : vector<8x128xf32>
    %27 = math.exp %26 : vector<8x128xf32>
    %28 = math.log1p %27 : vector<8x128xf32>
    %29 = arith.addf %23, %28 : vector<8x128xf32>
    %cst_17 = arith.constant 1.000000e-03 : f32
    %30 = vector.broadcast %cst_17 : f32 to vector<8x128xf32>
    %31 = arith.addf %29, %30 : vector<8x128xf32>
    %c8_i32 = arith.constant 8 : i32
    %32 = vector.broadcast %c8_i32 : i32 to vector<8x128xi32>
    %33 = arith.cmpi slt, %20, %32 : vector<8x128xi32>
    %34 = arith.select %33, %21, %31 : vector<8x128xi1>, vector<8x128xf32>
    %c0_18 = arith.constant 0 : index
    %c0_19 = arith.constant 0 : index
    %35 = vector.load %arg6[%c0_18, %c0_19] : memref<8x128xf32, #tpu.memory_space<vmem>>, vector<8x128xf32>
    tpu.vector_store %arg6[%c0_18, %c0_19], %34 {strides = array<i32>} : memref<8x128xf32, #tpu.memory_space<vmem>>, vector<8x128xf32>,
    return
  }
  func.func @transform_0(%arg0: i32) -> (i32, i32) {
    %c0_i32 = arith.constant 0 : i32
    %c0_i32_0 = arith.constant 0 : i32
    return %arg0, %c0_i32 : i32, i32
  }
  func.func @transform_1(%arg0: i32) -> (i32, i32) {
    %c0_i32 = arith.constant 0 : i32
    %c0_i32_0 = arith.constant 0 : i32
    %c0_i32_1 = arith.constant 0 : i32
    return %c0_i32, %c0_i32_0 : i32, i32
  }
  func.func @transform_2(%arg0: i32) -> (i32, i32) {
    %c0_i32 = arith.constant 0 : i32
    %c0_i32_0 = arith.constant 0 : i32
    %c0_i32_1 = arith.constant 0 : i32
    return %c0_i32, %c0_i32_0 : i32, i32
  }
  func.func @transform_3(%arg0: i32) -> (i32, i32) {
    %c0_i32 = arith.constant 0 : i32
    %c0_i32_0 = arith.constant 0 : i32
    %c0_i32_1 = arith.constant 0 : i32
    return %c0_i32, %c0_i32_0 : i32, i32
  }
  func.func @transform_4(%arg0: i32) -> (i32, i32) {
    %c0_i32 = arith.constant 0 : i32
    %c0_i32_0 = arith.constant 0 : i32
    %c0_i32_1 = arith.constant 0 : i32
    return %c0_i32, %c0_i32_0 : i32, i32
  }
  func.func @transform_5(%arg0: i32) -> (i32, i32) {
    %c0_i32 = arith.constant 0 : i32
    %c0_i32_0 = arith.constant 0 : i32
    return %arg0, %c0_i32 : i32, i32
  }
}

</mosaic_0001>

<bundles_post_ra>
// kernel: tpu_custom_call.1
= control target key start
LH: loop header
LB: loop body
LE: loop exit
PB: predicated region body
PF: predicated region fallthrough
CT: control target
= control target key end

     0   :  { %10 = vsyncpa [#allocation3], 0  ;;  %s832_s0 = inlined_call_operand.hbm [shape: f32[8,32], index: 0, kind: input, shape index: {}]   ;;  %s833_s1 = inlined_call_operand.hbm [shape: f32[32,128], index: 1, kind: input, shape index: {}]   ;;  %s834_s2 = inlined_call_operand.hbm [shape: f32[128,128], index: 2, kind: input, shape index: {}]   ;;  %s835_s3 = inlined_call_operand.hbm [shape: f32[128,128], index: 3, kind: input, shape index: {}]   ;;  %s836_s4 = inlined_call_operand.vmem [shape: f32[3,128], index: 4, kind: input, shape index: {}]   ;;  %s837_s5 = inlined_call_operand.hbm [shape: f32[8,128], index: 5, kind: output, shape index: {}]  }
   0x1   :  { %11 = vsyncpa [#allocation6], 0 }
   0x2   :  { %12 = vsyncpa [#allocation9], 0 }
   0x3   :  { %13 = vsyncpa [#allocation4], 0  ;;  %s693_s18 = smov [#allocation5]   ;;  %s575_s22 = scalar_lea.hbm %s833_s1, 512 }
   0x4   :  { %s29_s19 = sshll.u32 %s693_s18, 4  ;;  %p576_p0 = scmp.ne.s32.totalorder %s833_s1, %s575_s22  ;;  %s30_s19 = int_to_ptr.vmem [resolvable:$true] %s29_s19 }
   0x5   :  { %p579_p1 = scmp.lt.u32.totalorder %s575_s22, %s833_s1 }
   0x7   :  { %p581_p2 = pnand %p579_p1, %p576_p0 }
   0x9   :  { %584 = shalt.err (!%p581_p2)
}
   0xa   :  { %s585_s27 = scalar_lea.vmem %s30_s19, 512  ;;  %p590_p4 = scmp.lt.s32.totalorder %s30_s19, %s30_s19 }
   0xb   :  { %p586_p3 = scmp.ne.s32.totalorder %s30_s19, %s585_s27  ;;  %p591_p5 = scmp.lt.s32.totalorder %s585_s27, %s585_s27 }
   0xd   :  { %p592_p6 = por %p591_p5, %p590_p4 }
   0xf   :  { %p593_p7 = pnand %p592_p6, %p586_p3 }
  0x11   :  { %596 = shalt.err (!%p593_p7)
}
  0x12   :  { %s694_s28 = smov 128   ;;  %s695_s29 = smov 8  }
  0x13   :  { %35 = dma.hbm_to_vmem [thread:$0]  %s833_s1, 512, %s30_s19, [#allocation6], %s694_s28, %s694_s28, %s695_s29  }
  0x14   :  { %s696_s7 = smov [#allocation2]   ;;  %s697_s9 = smov [#allocation7]  }
  0x15   :  { %s20_s8 = sshll.u32 %s696_s7, 4  ;;  %s41_s10 = sshll.u32 %s697_s9, 4  ;;  %s21_s8 = int_to_ptr.vmem [resolvable:$true] %s20_s8  ;;  %s42_s10 = int_to_ptr.vmem [resolvable:$true] %s41_s10 }
  0x16   :  { %s597_s13 = scalar_lea.hbm %s832_s0, 128 }
  0x17   :  { %p598_p8 = scmp.ne.s32.totalorder %s832_s0, %s597_s13  ;;  %p601_p9 = scmp.lt.u32.totalorder %s597_s13, %s832_s0 }
  0x19   :  { %p603_p10 = pnand %p601_p9, %p598_p8 }
  0x1b   :  { %606 = shalt.err (!%p603_p10)
}
  0x1c   :  { %s607_s1 = scalar_lea.vmem %s21_s8, 128  ;;  %p612_p12 = scmp.lt.s32.totalorder %s21_s8, %s21_s8 }
  0x1d   :  { %p608_p11 = scmp.ne.s32.totalorder %s21_s8, %s607_s1  ;;  %p613_p13 = scmp.lt.s32.totalorder %s607_s1, %s607_s1 }
  0x1f   :  { %p614_p0 = por %p613_p13, %p612_p12 }
  0x21   :  { %p615_p1 = pnand %p614_p0, %p608_p11 }
  0x23   :  { %618 = shalt.err (!%p615_p1)
}
  0x24   :  { %23 = dma.hbm_to_vmem [thread:$0]  %s832_s0, 128, %s21_s8, [#allocation3]  }
  0x25   :  { %s619_s22 = scalar_lea.hbm %s834_s2, 2048 }
  0x26   :  { %p620_p2 = scmp.ne.s32.totalorder %s834_s2, %s619_s22  ;;  %p623_p3 = scmp.lt.u32.totalorder %s619_s22, %s834_s2 }
  0x28   :  { %p625_p4 = pnand %p623_p3, %p620_p2 }
  0x2a   :  { %628 = shalt.err (!%p625_p4)
}
  0x2b   :  { %s629_s27 = scalar_lea.vmem %s42_s10, 2048  ;;  %p634_p6 = scmp.lt.s32.totalorder %s42_s10, %s42_s10 }
  0x2c   :  { %p630_p5 = scmp.ne.s32.totalorder %s42_s10, %s629_s27  ;;  %p635_p7 = scmp.lt.s32.totalorder %s629_s27, %s629_s27 }
  0x2e   :  { %p636_p8 = por %p635_p7, %p634_p6 }
  0x30   :  { %p637_p9 = pnand %p636_p8, %p630_p5 }
  0x32   :  { %640 = shalt.err (!%p637_p9)
}
  0x33   :  { %47 = dma.hbm_to_vmem [thread:$0]  %s834_s2, 2048, %s42_s10, [#allocation6], %s694_s28, %s694_s28, %s695_s29  }
  0x34   :  { %s698_s6 = smov [#allocation8]   ;;  %s641_s11 = scalar_lea.hbm %s835_s3, 2048 }
  0x35   :  { %s53_s7 = sshll.u32 %s698_s6, 4  ;;  %p642_p10 = scmp.ne.s32.totalorder %s835_s3, %s641_s11  ;;  %s54_s7 = int_to_ptr.vmem [resolvable:$true] %s53_s7 }
  0x36   :  { %p645_p11 = scmp.lt.u32.totalorder %s641_s11, %s835_s3 }
  0x38   :  { %p647_p12 = pnand %p645_p11, %p642_p10 }
  0x3a   :  { %650 = shalt.err (!%p647_p12)
}
  0x3b   :  { %s651_s16 = scalar_lea.vmem %s54_s7, 2048  ;;  %p656_p0 = scmp.lt.s32.totalorder %s54_s7, %s54_s7 }
  0x3c   :  { %p652_p13 = scmp.ne.s32.totalorder %s54_s7, %s651_s16  ;;  %p657_p1 = scmp.lt.s32.totalorder %s651_s16, %s651_s16 }
  0x3e   :  { %p658_p2 = por %p657_p1, %p656_p0 }
  0x40   :  { %p659_p3 = pnand %p658_p2, %p652_p13 }
  0x42   :  { %662 = shalt.err (!%p659_p3)
}
  0x43   :  { %59 = dma.hbm_to_vmem [thread:$0]  %s835_s3, 2048, %s54_s7, [#allocation9], %s694_s28, %s694_s28, %s695_s29  }
  0x44   :  { %685 = dma.done.wait [#allocation3], 128  }
  0x45   :  { %686 = vsyncadd [#allocation3], 4294967168 }
  0x46   :  { %687 = dma.done.wait [#allocation6], 2560  }
  0x47   :  { %688 = vsyncadd [#allocation6], 4294964736 }
  0x48   :  { %689 = dma.done.wait [#allocation9], 2048  }
  0x49   :  { %690 = vsyncadd [#allocation9], 4294965248  ;;  %v699_v0 = vmov 0.0|0.0   ;;  %vm700_vm0 = vmmov 0   ;;  %v701_v1 = vmov 0.0   ;;  %v78_v2 = vld [vmem:[#allocation5] sm:$0xff] }
  0x4a   :  { %505 = vmatprep.subr.bf16.mxu0 %v699_v0  ;;  %432 = vmatprep.mubr.msk.f32.mxu0 %vm700_vm0, %v701_v1  ;;  %v79_v3 = vld [vmem:[#allocation5 + $0x8] sm:$0xff]  ;;  %v80_v4 = vld [vmem:[#allocation5 + $0x10] sm:$0xff]  ;;  %v81_v6 = vld [vmem:[#allocation5 + $0x18] sm:$0xff]  ;;  %vm86_vm1 = vcmask 261120  }
  0x4b   :  { %511 = vmatprep.subr.bf16.mxu1 %v699_v0  ;;  %467 = vmatprep.mubr.msk.f32.mxu1 %vm700_vm0, %v701_v1  ;;  %v506_v5 = vpack.c.bf16 %v79_v3, %v78_v2  ;;  %v161_v7 = vld [vmem:[#allocation7] sm:$0xff]  ;;  %v162_v8 = vld [vmem:[#allocation7 + $0x8] sm:$0xff]  ;;  %v163_v9 = vld [vmem:[#allocation7 + $0x10] sm:$0xff]  ;;  %v509_v11 = vpack.c.bf16 %v81_v6, %v80_v4 }
  0x4c   :  { %v164_v10 = vld [vmem:[#allocation7 + $0x18] sm:$0xff]  ;;  %v512_v12 = vpack.c.bf16 %v162_v8, %v161_v7  ;;  %v165_v14 = vld [vmem:[#allocation7 + $0x20] sm:$0xff]  ;;  %v166_v15 = vld [vmem:[#allocation7 + $0x28] sm:$0xff] }
  0x4d   :  { %507 = vmatpush3.bf16.msra.mxu0 %v506_v5  ;;  %v515_v13 = vpack.c.bf16 %v164_v10, %v163_v9  ;;  %v74_v16 = vld [vmem:[#allocation2] sm:$0xff]  ;;  %v518_v17 = vpack.c.bf16 %v166_v15, %v165_v14  ;;  %v167_v18 = vld [vmem:[#allocation7 + $0x30] sm:$0xff]  ;;  %v169_v21 = vld [vmem:[#allocation7 + $0x40] sm:$0xff]  ;;  %v342_v14 = vlaneseq }
  0x4e   :  { %508 = vmatprep.subr.bf16.mxu0 %v699_v0  ;;  %513 = vmatpush3.bf16.msra.mxu1 %v512_v12  ;;  %v168_v19 = vld [vmem:[#allocation7 + $0x38] sm:$0xff]  ;;  %v170_v22 = vld [vmem:[#allocation7 + $0x48] sm:$0xff]  ;;  %v171_v24 = vld [vmem:[#allocation7 + $0x50] sm:$0xff] }
  0x4f   :  { %514 = vmatprep.subr.bf16.mxu1 %v699_v0  ;;  %v521_v20 = vpack.c.bf16 %v168_v19, %v167_v18  ;;  %v524_v23 = vpack.c.bf16 %v170_v22, %v169_v21  ;;  %v172_v25 = vld [vmem:[#allocation7 + $0x58] sm:$0xff]  ;;  %v173_v27 = vld [vmem:[#allocation7 + $0x60] sm:$0xff]  ;;  %v174_v28 = vld [vmem:[#allocation7 + $0x68] sm:$0xff]  ;;  %v343_v19 = vand.u32 127, %v342_v14 }
  0x50   :  { %v527_v26 = vpack.c.bf16 %v172_v25, %v171_v24  ;;  %v530_v29 = vpack.c.bf16 %v174_v28, %v173_v27  ;;  %v175_v30 = vld [vmem:[#allocation7 + $0x70] sm:$0xff]  ;;  %v176_v31 = vld [vmem:[#allocation7 + $0x78] sm:$0xff]  ;;  %v252_v33 = vld [vmem:[#allocation8] sm:$0xff] }
  0x51   :  { %510 = vmatpush3.bf16.msra.mxu0 %v509_v11  ;;  %v533_v32 = vpack.c.bf16 %v176_v31, %v175_v30  ;;  %v253_v34 = vld [vmem:[#allocation8 + $0x8] sm:$0xff]  ;;  %v254_v35 = vld [vmem:[#allocation8 + $0x10] sm:$0xff]  ;;  %v255_v37 = vld [vmem:[#allocation8 + $0x18] sm:$0xff]  ;;  %vm361_vm3 = vcmp.lt.s32.totalorder %v343_v19, 8 }
  0x52   :  { %535 = vmatprep.subr.bf16.mxu0 %v699_v0  ;;  %516 = vmatpush3.bf16.msra.mxu1 %v515_v13  ;;  %v536_v36 = vpack.c.bf16 %v253_v34, %v252_v33  ;;  %v539_v38 = vpack.c.bf16 %v255_v37, %v254_v35  ;;  %v256_v39 = vld [vmem:[#allocation8 + $0x20] sm:$0xff]  ;;  %v257_v40 = vld [vmem:[#allocation8 + $0x28] sm:$0xff]  ;;  %v258_v42 = vld [vmem:[#allocation8 + $0x30] sm:$0xff] }
  0x53   :  { %517 = vmatprep.subr.bf16.mxu1 %v699_v0  ;;  %v542_v41 = vpack.c.bf16 %v257_v40, %v256_v39  ;;  %v259_v43 = vld [vmem:[#allocation8 + $0x38] sm:$0xff]  ;;  %v260_v45 = vld [vmem:[#allocation8 + $0x40] sm:$0xff]  ;;  %v261_v46 = vld [vmem:[#allocation8 + $0x48] sm:$0xff] }
  0x54   :  { %433 = vmatmul.mubr.msk.f32.vlgmr.msra.gmra.mrb[0].mxu0 %vm86_vm1, %v74_v16  ;;  %v545_v44 = vpack.c.bf16 %v259_v43, %v258_v42  ;;  %v548_v47 = vpack.c.bf16 %v261_v46, %v260_v45  ;;  %v262_v48 = vld [vmem:[#allocation8 + $0x50] sm:$0xff]  ;;  %v263_v49 = vld [vmem:[#allocation8 + $0x58] sm:$0xff]  ;;  %v264_v51 = vld [vmem:[#allocation8 + $0x60] sm:$0xff] }
  0x55   :  { %502 = vmatprep.mubr.msk.f32.mxu0 %vm700_vm0, %v701_v1  ;;  %537 = vmatpush3.bf16.msra.mxu0 %v536_v36  ;;  %v551_v50 = vpack.c.bf16 %v263_v49, %v262_v48  ;;  %v265_v52 = vld [vmem:[#allocation8 + $0x68] sm:$0xff]  ;;  %v381_v54 = vld [vmem:[%s836_s4] ss:$0 sm:$0xff]  ;;  %v266_v59 = vld [vmem:[#allocation8 + $0x70] sm:$0xff] }
  0x56   :  { %519 = vmatpush3.bf16.msra.mxu1 %v518_v17  ;;  %538 = vmatprep.subr.bf16.mxu0 %v699_v0  ;;  %v554_v53 = vpack.c.bf16 %v265_v52, %v264_v51  ;;  %v267_v60 = vld [vmem:[#allocation8 + $0x78] sm:$0xff] }
  0x57   :  { %520 = vmatprep.subr.bf16.mxu1 %v699_v0  ;;  %v557_v61 = vpack.c.bf16 %v267_v60, %v266_v59  ;;  %v383_v62 = vld [vmem:[%s836_s4 + $0x1] ss:$0 sm:$0xff]  ;;  %v384_v3 = vld [vmem:[%s836_s4 + $0x2] ss:$0 sm:$0xff]  ;;  %s702_s4 = smov [#allocation10]  }
  0x58   :  { %s370_s19 = sshll.u32 %s702_s4, 4  ;;  %s371_s19 = int_to_ptr.vmem [resolvable:$true] %s370_s19 }
  0x59   :  { %540 = vmatpush3.bf16.msra.mxu0 %v539_v38  ;;  %s663_s20 = scalar_lea.vmem %s371_s19, 128  ;;  %p668_p5 = scmp.lt.s32.totalorder %s371_s19, %s371_s19 }
  0x5a   :  { %522 = vmatpush3.bf16.msra.mxu1 %v521_v20  ;;  %541 = vmatprep.subr.bf16.mxu0 %v699_v0  ;;  %p664_p4 = scmp.ne.s32.totalorder %s371_s19, %s663_s20  ;;  %p669_p6 = scmp.lt.s32.totalorder %s663_s20, %s663_s20 }
  0x5b   :  { %523 = vmatprep.subr.bf16.mxu1 %v699_v0 }
  0x5c   :  { %p670_p7 = por %p669_p6, %p668_p5 }
  0x5d   :  { %543 = vmatpush3.bf16.msra.mxu0 %v542_v41 }
  0x5e   :  { %525 = vmatpush3.bf16.msra.mxu1 %v524_v23  ;;  %544 = vmatprep.subr.bf16.mxu0 %v699_v0  ;;  %p671_p8 = pnand %p670_p7, %p664_p4 }
  0x5f   :  { %526 = vmatprep.subr.bf16.mxu1 %v699_v0 }
  0x61   :  { %546 = vmatpush3.bf16.msra.mxu0 %v545_v44 }
  0x62   :  { %528 = vmatpush3.bf16.msra.mxu1 %v527_v26  ;;  %547 = vmatprep.subr.bf16.mxu0 %v699_v0 }
  0x63   :  { %529 = vmatprep.subr.bf16.mxu1 %v699_v0 }
  0x65   :  { %549 = vmatpush3.bf16.msra.mxu0 %v548_v47 }
  0x66   :  { %531 = vmatpush3.bf16.msra.mxu1 %v530_v29  ;;  %550 = vmatprep.subr.bf16.mxu0 %v699_v0 }
  0x67   :  { %532 = vmatprep.subr.bf16.mxu1 %v699_v0 }
  0x69   :  { %552 = vmatpush3.bf16.msra.mxu0 %v551_v50 }
  0x6a   :  { %534 = vmatpush3.bf16.msra.mxu1 %v533_v32  ;;  %553 = vmatprep.subr.bf16.mxu0 %v699_v0 }
  0x6d   :  { %555 = vmatpush3.bf16.msra.mxu0 %v554_v53 }
  0x6e   :  { %556 = vmatprep.subr.bf16.mxu0 %v699_v0 }
  0x71   :  { %558 = vmatpush3.bf16.msra.mxu0 %v557_v61 }
 0x127   :  { %v156_v55 = vpop.f32.mrb[0].mxu0 }
 0x128   :  { %v157_v56 = vadd.f32 %v381_v54, %v156_v55  ;;  %v434_v57 = vpop.f32.mrb[1].mxu0 }
 0x12a   :  { %v160_v58 = vmax.f32 %v157_v56, 0.0 }
 0x12c   :  { %468 = vmatmul.mubr.f32.vlgmr.msra.gmra.mrb[0].mxu1 %v160_v58 }
 0x1ff   :  { %v247_v63 = vpop.f32.mrb[0].mxu1 }
 0x200   :  { %v248_v1 = vadd.f32 %v383_v62, %v247_v63  ;;  %v469_v0 = vpop.f32.mrb[1].mxu1 }
 0x202   :  { %v251_v2 = vmax.f32 %v248_v1, 0.0 }
 0x204   :  { %503 = vmatmul.mubr.f32.vlgmr.msra.gmra.mrb[2].mxu0 %v251_v2 }
 0x2d7   :  { %v338_v4 = vpop.f32.mrb[2].mxu0 }
 0x2d8   :  { %v339_v5 = vadd.f32 %v384_v3, %v338_v4  ;;  %v504_v6 = vpop.f32.mrb[3].mxu0 }
 0x2da   :  { %v346_v7 = vand.u32 2147483647, %v339_v5  ;;  %v345_v20 = vmax.f32 %v339_v5, 0.0 }
 0x2dc   :  { %v347_v8 = vsub.f32 0.0, %v346_v7 }
 0x2de   :  { %v348_v9 = vmul.f32 1.442695, %v347_v8 }
 0x2e0   :  { %569 = vpow2.f32 %v348_v9 }
 0x2ea   :  { %v570_v10 = vpop.eup %569 }
 0x2eb   :  { %v350_v11 = vadd.f32 1.0, %v570_v10  ;;  %v353_v12 = vmul.f32 -0.5, %v570_v10  ;;  %v356_v15 = vand.u32 2147483647, %v570_v10 }
 0x2ed   :  { %571 = vlog2.f32 %v350_v11  ;;  %v354_v13 = vadd.f32 1.0, %v353_v12  ;;  %vm357_vm2 = vcmp.lt.f32.partialorder %v356_v15, 0.0004427343 }
 0x2ee   :  { %573 = vtanh.f32 %v339_v5 }
 0x2ef   :  { %v355_v18 = vmul.f32 %v570_v10, %v354_v13 }
 0x2f7   :  { %v572_v16 = vpop.eup %571 }
 0x2f8   :  { %v352_v17 = vmul.f32 0.6931472, %v572_v16  ;;  %v574_v24 = vpop.eup %573 }
 0x2fa   :  { %v358_v21 = vsel %vm357_vm2, %v355_v18, %v352_v17 }
 0x2fb   :  { %v359_v22 = vadd.f32 %v358_v21, %v345_v20 }
 0x2fd   :  { %v360_v23 = vadd.f32 0.001, %v359_v22 }
 0x2ff   :  { %v362_v25 = vsel %vm361_vm3, %v574_v24, %v360_v23 }
 0x300   :  { %363 = vst [vmem:[#allocation10] sm:$0xff] %v362_v25 }
 0x301   :  { %674 = shalt.err (!%p671_p8)
}
 0x302   :  { %s675_s23 = scalar_lea.hbm %s837_s5, 128 }
 0x303   :  { %p676_p9 = scmp.ne.s32.totalorder %s837_s5, %s675_s23  ;;  %p679_p10 = scmp.lt.u32.totalorder %s675_s23, %s837_s5 }
 0x305   :  { %p681_p11 = pnand %p679_p10, %p676_p9 }
 0x307   :  { %684 = shalt.err (!%p681_p11)
}
 0x308   :  { %373 = dma.vmem_to_hbm [thread:$0]  %s371_s19, 128, %s837_s5, [#allocation4]  }
 0x309   :  { %691 = dma.done.wait [#allocation4], 128  }
 0x30a   :  { %692 = vsyncadd [#allocation4], 4294967168 }
 0x30b   :  { %377 = vsyncpa [#allocation3], 1 }
 0x30c   :  { %378 = vsyncpa [#allocation6], 1 }
 0x30d   :  { %379 = vsyncpa [#allocation9], 1 }
 0x30e   :  { %380 = vsyncpa [#allocation4], 1 }

</bundles_post_ra>
